<compile_context>
chip_gen: v7x
topology: tpu7x:2x2x1
jax: 0.10.0
libtpu: 0.0.40
codegen_flags: <defaults>
</compile_context>

<pallas_src>
import jax
import jax.numpy as jnp
from jax.experimental import pallas as pl
from jax.experimental.pallas import tpu as pltpu


def rnn_classifier_kernel(x_ref, mask_ref, w_ih_ref, w_hh_ref, b_ref,
                          fc_w_ref, fc_b_ref, out_ref):
    T, B, H2 = mask_ref.shape
    H = H2 // 2

    # Hoist every weight/bias load out of the recurrence (loaded once into vregs;
    # 4 weight tiles + biases fit easily in the 64-vreg file at this size).
    w_hh = w_hh_ref[...]                 # (2H, 2H) block-diagonal [fwd | bwd]
    fc_w = fc_w_ref[...]                 # (1, 2H), pre-permuted to [fwd | bwd]
    bias = b_ref[...]                    # (1, 2H) = [b_ih_f+b_hh_f | b_ih_b+b_hh_b]

    # One matmul for ALL input projections of both directions (off the serial
    # dependency chain): (T*B, H) @ (H, 2H) -> (T*B, 2H).
    u = jnp.dot(x_ref[...], w_ih_ref[...],
                preferred_element_type=jnp.float32) + bias

    # Fused bidirectional recurrence on a single (B, 2H) state:
    #   lanes [0, H)  = forward hidden, consumes u at timestep s
    #   lanes [H, 2H) = backward hidden, consumes u at timestep T-1-s
    lane_is_fwd = jax.lax.broadcasted_iota(jnp.int32, (B, H2), 1) < H

    h = jnp.zeros((B, H2), jnp.float32)
    for s in range(T):                   # T = 8: static unroll is fine at this size
        u_f = u[s * B:(s + 1) * B, :]
        u_b = u[(T - 1 - s) * B:(T - s) * B, :]
        u_s = jnp.where(lane_is_fwd, u_f, u_b)
        h_new = jnp.tanh(u_s + jnp.dot(h, w_hh,
                                       preferred_element_type=jnp.float32))
        m = mask_ref[s]                  # (B, 2H) 0/1 f32, precomputed in wrapper
        h = h + m * (h_new - h)          # freeze state past each sequence's end

    # Final FC as VPU multiply + lane reduce (avoids concat + N=1 MXU matmul).
    logits = jnp.sum(h * fc_w, axis=-1, keepdims=True) + fc_b_ref[...]
    out_ref[...] = jax.nn.sigmoid(logits)


def make_params(key, vocab, hidden):
    ks = jax.random.split(key, 11)
    s = 1.0 / (hidden ** 0.5)
    s_fc = 1.0 / ((2 * hidden) ** 0.5)

    def u(k, shape, scale):
        return jax.random.uniform(k, shape, jnp.float32, -scale, scale)

    return dict(
        embedding=jax.random.normal(ks[0], (vocab, hidden), jnp.float32),
        w_ih_f=u(ks[1], (hidden, hidden), s), w_hh_f=u(ks[2], (hidden, hidden), s),
        b_ih_f=u(ks[3], (hidden,), s),        b_hh_f=u(ks[4], (hidden,), s),
        w_ih_b=u(ks[5], (hidden, hidden), s), w_hh_b=u(ks[6], (hidden, hidden), s),
        b_ih_b=u(ks[7], (hidden,), s),        b_hh_b=u(ks[8], (hidden,), s),
        fc_w=u(ks[9], (1, 2 * hidden), s_fc), fc_b=u(ks[10], (1,), s_fc),
    )


def rnn_classifier_forward(params, token_ids, seq_lengths):
    """token_ids: (batch, seq) int32, seq_lengths: (batch,) int32 -> (batch, 1) float32."""
    B, T = token_ids.shape
    H = params["embedding"].shape[1]
    H2 = 2 * H

    # Glue (plain JAX): input.t() + embedding gather, time-major, flattened for
    # the single in-kernel input-projection matmul.
    x = params["embedding"][token_ids.T].astype(jnp.float32)            # (T, B, H)
    x_flat = x.reshape(T * B, H)

    lens = seq_lengths.astype(jnp.int32)                                # (B,)

    # Per-step 0/1 masks for the fused bidirectional recurrence:
    #   step s: forward half advances while s < len[b],
    #           backward half advances while (T-1-s) < len[b].
    t_idx = jnp.arange(T, dtype=jnp.int32)[:, None]                     # (T, 1)
    fwd = (t_idx < lens[None, :]).astype(jnp.float32)                   # (T, B)
    bwd = ((T - 1 - t_idx) < lens[None, :]).astype(jnp.float32)         # (T, B)
    mask = jnp.concatenate(
        [jnp.broadcast_to(fwd[:, :, None], (T, B, H)),
         jnp.broadcast_to(bwd[:, :, None], (T, B, H))], axis=-1)        # (T, B, 2H)

    # Weight packing for the fused state h = [h_fwd | h_bwd]:
    w_ih = jnp.concatenate([params["w_ih_f"].T, params["w_ih_b"].T], axis=1)   # (H, 2H)
    zeros = jnp.zeros((H, H), jnp.float32)
    w_hh = jnp.block([[params["w_hh_f"].T, zeros],
                      [zeros, params["w_hh_b"].T]])                            # (2H, 2H)
    b = jnp.concatenate([params["b_ih_f"] + params["b_hh_f"],
                         params["b_ih_b"] + params["b_hh_b"]]).reshape(1, H2)
    # torch: hidden_cat = [h_bwd, h_fwd]; our state is [h_fwd | h_bwd] -> permute fc_w.
    fc_w = jnp.concatenate([params["fc_w"][:, H:], params["fc_w"][:, :H]],
                           axis=1).astype(jnp.float32)                         # (1, 2H)
    fc_b = params["fc_b"].reshape(1, 1).astype(jnp.float32)

    args = (x_flat, mask, w_ih, w_hh, b, fc_w, fc_b)

    # Gridless single invocation: at B=4, T=8, H=32 the kernel is pure serial
    # latency; everything is whole-array resident in VMEM (<100 KiB total).
    # A "parallel" batch grid axis (v7x 2-TC sharding) only pays off at B >= ~128.
    out = pl.pallas_call(
        rnn_classifier_kernel,
        out_shape=jax.ShapeDtypeStruct((B, 1), jnp.float32),
        in_specs=[pl.BlockSpec(memory_space=pltpu.MemorySpace.VMEM)] * len(args),
        out_specs=pl.BlockSpec(memory_space=pltpu.MemorySpace.VMEM),
    )(*args)
    return out


def rnn_classifier_ref(params, token_ids, seq_lengths):
    """Pure-JAX reference with identical semantics (for verification)."""
    x = params["embedding"][token_ids.T].astype(jnp.float32)
    T, B, H = x.shape
    lens = seq_lengths.astype(jnp.int32).reshape(1, B).T  # (B, 1)

    def cell(x_t, h, wih, whh, bih, bhh):
        return jnp.tanh(x_t @ wih.T + bih + h @ whh.T + bhh)

    h_f = jnp.zeros((B, H), jnp.float32)
    for t in range(T):
        hn = cell(x[t], h_f, params["w_ih_f"], params["w_hh_f"],
                  params["b_ih_f"], params["b_hh_f"])
        h_f = jnp.where(t < lens, hn, h_f)

    h_b = jnp.zeros((B, H), jnp.float32)
    for t in range(T - 1, -1, -1):
        hn = cell(x[t], h_b, params["w_ih_b"], params["w_hh_b"],
                  params["b_ih_b"], params["b_hh_b"])
        h_b = jnp.where(t < lens, hn, h_b)

    hc = jnp.concatenate([h_b, h_f], axis=1)
    return jax.nn.sigmoid(hc @ params["fc_w"].T + params["fc_b"])


if __name__ == "__main__":
    VOCAB, HIDDEN, BATCH, SEQ = 16, 32, 4, 8

    key = jax.random.PRNGKey(0)
    k_tok, k_par = jax.random.split(key)

    token_ids = jax.random.randint(k_tok, (BATCH, SEQ), 0, VOCAB, dtype=jnp.int32)
    # pack_padded_sequence expects lengths sorted descending; max == SEQ.
    seq_lengths = jnp.array([8, 6, 5, 3], dtype=jnp.int32)

    params = make_params(k_par, VOCAB, HIDDEN)

    out = rnn_classifier_forward(params, token_ids, seq_lengths)
    out = jax.block_until_ready(out)

    ref = rnn_classifier_ref(params, token_ids, seq_lengths)
    assert out.shape == (BATCH, 1) and out.dtype == jnp.float32
    assert jnp.allclose(out, ref, rtol=2e-3, atol=2e-3), (out, ref)

    print("KERNEL_OK")
</pallas_src>

<mosaic_0001>
module attributes {stable_mosaic.version = 11 : i64} {
  func.func @rnn_classifier_kernel(%arg0: memref<32x32xf32, #tpu.memory_space<vmem>>, %arg1: memref<8x4x64xf32, #tpu.memory_space<vmem>>, %arg2: memref<32x64xf32, #tpu.memory_space<vmem>>, %arg3: memref<64x64xf32, #tpu.memory_space<vmem>>, %arg4: memref<1x64xf32, #tpu.memory_space<vmem>>, %arg5: memref<1x64xf32, #tpu.memory_space<vmem>>, %arg6: memref<1x1xf32, #tpu.memory_space<vmem>>, %arg7: memref<4x1xf32, #tpu.memory_space<vmem>>) attributes {dimension_semantics = [], scalar_prefetch = 0 : i64, scratch_operands = 0 : i64, tpu.core_type = #tpu.core_type<tc>} {
    %c0 = arith.constant 0 : index
    %c0_0 = arith.constant 0 : index
    %0 = vector.load %arg3[%c0, %c0_0] : memref<64x64xf32, #tpu.memory_space<vmem>>, vector<64x64xf32>
    %c0_1 = arith.constant 0 : index
    %c0_2 = arith.constant 0 : index
    %1 = vector.load %arg5[%c0_1, %c0_2] : memref<1x64xf32, #tpu.memory_space<vmem>>, vector<1x64xf32>
    %c0_3 = arith.constant 0 : index
    %c0_4 = arith.constant 0 : index
    %2 = vector.load %arg4[%c0_3, %c0_4] : memref<1x64xf32, #tpu.memory_space<vmem>>, vector<1x64xf32>
    %c0_5 = arith.constant 0 : index
    %c0_6 = arith.constant 0 : index
    %3 = vector.load %arg0[%c0_5, %c0_6] : memref<32x32xf32, #tpu.memory_space<vmem>>, vector<32x32xf32>
    %c0_7 = arith.constant 0 : index
    %c0_8 = arith.constant 0 : index
    %4 = vector.load %arg2[%c0_7, %c0_8] : memref<32x64xf32, #tpu.memory_space<vmem>>, vector<32x64xf32>
    %cst = arith.constant dense<0.000000e+00> : vector<32x64xf32>
    %5 = tpu.matmul %3, %4, %cst {dimension_numbers = #tpu.dot_dimension_numbers<[1], [0], [0], [1], [0, 0, 1, 1], [], []>} : vector<32x32xf32>, vector<32x64xf32>, vector<32x64xf32> -> vector<32x64xf32>
    %6 = vector.broadcast %2 : vector<1x64xf32> to vector<32x64xf32>
    %7 = arith.addf %5, %6 : vector<32x64xf32>
    %8 = tpu.iota {dimensions = array<i32: 1>} : vector<4x64xi32>
    %c32_i32 = arith.constant 32 : i32
    %9 = vector.broadcast %c32_i32 : i32 to vector<4x64xi32>
    %10 = arith.cmpi slt, %8, %9 : vector<4x64xi32>
    %cst_9 = arith.constant 0.000000e+00 : f32
    %11 = vector.broadcast %cst_9 : f32 to vector<4x64xf32>
    %12 = vector.extract_strided_slice %7 {offsets = [0, 0], sizes = [4, 64], strides = [1, 1]} : vector<32x64xf32> to vector<4x64xf32>
    %13 = vector.extract_strided_slice %7 {offsets = [28, 0], sizes = [4, 64], strides = [1, 1]} : vector<32x64xf32> to vector<4x64xf32>
    %14 = arith.select %10, %12, %13 : vector<4x64xi1>, vector<4x64xf32>
    %cst_10 = arith.constant dense<0.000000e+00> : vector<4x64xf32>
    %15 = tpu.matmul %11, %0, %cst_10 {dimension_numbers = #tpu.dot_dimension_numbers<[1], [0], [0], [1], [0, 0, 1, 1], [], []>} : vector<4x64xf32>, vector<64x64xf32>, vector<4x64xf32> -> vector<4x64xf32>
    %16 = arith.addf %14, %15 : vector<4x64xf32>
    %17 = math.tanh %16 : vector<4x64xf32>
    %c0_11 = arith.constant 0 : index
    %c0_12 = arith.constant 0 : index
    %c0_13 = arith.constant 0 : index
    %18 = vector.load %arg1[%c0_11, %c0_12, %c0_13] : memref<8x4x64xf32, #tpu.memory_space<vmem>>, vector<1x4x64xf32>
    %19 = vector.shape_cast %18 : vector<1x4x64xf32> to vector<4x64xf32>
    %20 = arith.subf %17, %11 : vector<4x64xf32>
    %21 = arith.mulf %19, %20 : vector<4x64xf32>
    %22 = arith.addf %11, %21 : vector<4x64xf32>
    %23 = vector.extract_strided_slice %7 {offsets = [4, 0], sizes = [4, 64], strides = [1, 1]} : vector<32x64xf32> to vector<4x64xf32>
    %24 = vector.extract_strided_slice %7 {offsets = [24, 0], sizes = [4, 64], strides = [1, 1]} : vector<32x64xf32> to vector<4x64xf32>
    %25 = arith.select %10, %23, %24 : vector<4x64xi1>, vector<4x64xf32>
    %cst_14 = arith.constant dense<0.000000e+00> : vector<4x64xf32>
    %26 = tpu.matmul %22, %0, %cst_14 {dimension_numbers = #tpu.dot_dimension_numbers<[1], [0], [0], [1], [0, 0, 1, 1], [], []>} : vector<4x64xf32>, vector<64x64xf32>, vector<4x64xf32> -> vector<4x64xf32>
    %27 = arith.addf %25, %26 : vector<4x64xf32>
    %28 = math.tanh %27 : vector<4x64xf32>
    %c1 = arith.constant 1 : index
    %c0_15 = arith.constant 0 : index
    %c0_16 = arith.constant 0 : index
    %29 = vector.load %arg1[%c1, %c0_15, %c0_16] : memref<8x4x64xf32, #tpu.memory_space<vmem>>, vector<1x4x64xf32>
    %30 = vector.shape_cast %29 : vector<1x4x64xf32> to vector<4x64xf32>
    %31 = arith.subf %28, %22 : vector<4x64xf32>
    %32 = arith.mulf %30, %31 : vector<4x64xf32>
    %33 = arith.addf %22, %32 : vector<4x64xf32>
    %34 = vector.extract_strided_slice %7 {offsets = [8, 0], sizes = [4, 64], strides = [1, 1]} : vector<32x64xf32> to vector<4x64xf32>
    %35 = vector.extract_strided_slice %7 {offsets = [20, 0], sizes = [4, 64], strides = [1, 1]} : vector<32x64xf32> to vector<4x64xf32>
    %36 = arith.select %10, %34, %35 : vector<4x64xi1>, vector<4x64xf32>
    %cst_17 = arith.constant dense<0.000000e+00> : vector<4x64xf32>
    %37 = tpu.matmul %33, %0, %cst_17 {dimension_numbers = #tpu.dot_dimension_numbers<[1], [0], [0], [1], [0, 0, 1, 1], [], []>} : vector<4x64xf32>, vector<64x64xf32>, vector<4x64xf32> -> vector<4x64xf32>
    %38 = arith.addf %36, %37 : vector<4x64xf32>
    %39 = math.tanh %38 : vector<4x64xf32>
    %c2 = arith.constant 2 : index
    %c0_18 = arith.constant 0 : index
    %c0_19 = arith.constant 0 : index
    %40 = vector.load %arg1[%c2, %c0_18, %c0_19] : memref<8x4x64xf32, #tpu.memory_space<vmem>>, vector<1x4x64xf32>
    %41 = vector.shape_cast %40 : vector<1x4x64xf32> to vector<4x64xf32>
    %42 = arith.subf %39, %33 : vector<4x64xf32>
    %43 = arith.mulf %41, %42 : vector<4x64xf32>
    %44 = arith.addf %33, %43 : vector<4x64xf32>
    %45 = vector.extract_strided_slice %7 {offsets = [12, 0], sizes = [4, 64], strides = [1, 1]} : vector<32x64xf32> to vector<4x64xf32>
    %46 = vector.extract_strided_slice %7 {offsets = [16, 0], sizes = [4, 64], strides = [1, 1]} : vector<32x64xf32> to vector<4x64xf32>
    %47 = arith.select %10, %45, %46 : vector<4x64xi1>, vector<4x64xf32>
    %cst_20 = arith.constant dense<0.000000e+00> : vector<4x64xf32>
    %48 = tpu.matmul %44, %0, %cst_20 {dimension_numbers = #tpu.dot_dimension_numbers<[1], [0], [0], [1], [0, 0, 1, 1], [], []>} : vector<4x64xf32>, vector<64x64xf32>, vector<4x64xf32> -> vector<4x64xf32>
    %49 = arith.addf %47, %48 : vector<4x64xf32>
    %50 = math.tanh %49 : vector<4x64xf32>
    %c3 = arith.constant 3 : index
    %c0_21 = arith.constant 0 : index
    %c0_22 = arith.constant 0 : index
    %51 = vector.load %arg1[%c3, %c0_21, %c0_22] : memref<8x4x64xf32, #tpu.memory_space<vmem>>, vector<1x4x64xf32>
    %52 = vector.shape_cast %51 : vector<1x4x64xf32> to vector<4x64xf32>
    %53 = arith.subf %50, %44 : vector<4x64xf32>
    %54 = arith.mulf %52, %53 : vector<4x64xf32>
    %55 = arith.addf %44, %54 : vector<4x64xf32>
    %56 = vector.extract_strided_slice %7 {offsets = [16, 0], sizes = [4, 64], strides = [1, 1]} : vector<32x64xf32> to vector<4x64xf32>
    %57 = vector.extract_strided_slice %7 {offsets = [12, 0], sizes = [4, 64], strides = [1, 1]} : vector<32x64xf32> to vector<4x64xf32>
    %58 = arith.select %10, %56, %57 : vector<4x64xi1>, vector<4x64xf32>
    %cst_23 = arith.constant dense<0.000000e+00> : vector<4x64xf32>
    %59 = tpu.matmul %55, %0, %cst_23 {dimension_numbers = #tpu.dot_dimension_numbers<[1], [0], [0], [1], [0, 0, 1, 1], [], []>} : vector<4x64xf32>, vector<64x64xf32>, vector<4x64xf32> -> vector<4x64xf32>
    %60 = arith.addf %58, %59 : vector<4x64xf32>
    %61 = math.tanh %60 : vector<4x64xf32>
    %c4 = arith.constant 4 : index
    %c0_24 = arith.constant 0 : index
    %c0_25 = arith.constant 0 : index
    %62 = vector.load %arg1[%c4, %c0_24, %c0_25] : memref<8x4x64xf32, #tpu.memory_space<vmem>>, vector<1x4x64xf32>
    %63 = vector.shape_cast %62 : vector<1x4x64xf32> to vector<4x64xf32>
    %64 = arith.subf %61, %55 : vector<4x64xf32>
    %65 = arith.mulf %63, %64 : vector<4x64xf32>
    %66 = arith.addf %55, %65 : vector<4x64xf32>
    %67 = vector.extract_strided_slice %7 {offsets = [20, 0], sizes = [4, 64], strides = [1, 1]} : vector<32x64xf32> to vector<4x64xf32>
    %68 = vector.extract_strided_slice %7 {offsets = [8, 0], sizes = [4, 64], strides = [1, 1]} : vector<32x64xf32> to vector<4x64xf32>
    %69 = arith.select %10, %67, %68 : vector<4x64xi1>, vector<4x64xf32>
    %cst_26 = arith.constant dense<0.000000e+00> : vector<4x64xf32>
    %70 = tpu.matmul %66, %0, %cst_26 {dimension_numbers = #tpu.dot_dimension_numbers<[1], [0], [0], [1], [0, 0, 1, 1], [], []>} : vector<4x64xf32>, vector<64x64xf32>, vector<4x64xf32> -> vector<4x64xf32>
    %71 = arith.addf %69, %70 : vector<4x64xf32>
    %72 = math.tanh %71 : vector<4x64xf32>
    %c5 = arith.constant 5 : index
    %c0_27 = arith.constant 0 : index
    %c0_28 = arith.constant 0 : index
    %73 = vector.load %arg1[%c5, %c0_27, %c0_28] : memref<8x4x64xf32, #tpu.memory_space<vmem>>, vector<1x4x64xf32>
    %74 = vector.shape_cast %73 : vector<1x4x64xf32> to vector<4x64xf32>
    %75 = arith.subf %72, %66 : vector<4x64xf32>
    %76 = arith.mulf %74, %75 : vector<4x64xf32>
    %77 = arith.addf %66, %76 : vector<4x64xf32>
    %78 = vector.extract_strided_slice %7 {offsets = [24, 0], sizes = [4, 64], strides = [1, 1]} : vector<32x64xf32> to vector<4x64xf32>
    %79 = vector.extract_strided_slice %7 {offsets = [4, 0], sizes = [4, 64], strides = [1, 1]} : vector<32x64xf32> to vector<4x64xf32>
    %80 = arith.select %10, %78, %79 : vector<4x64xi1>, vector<4x64xf32>
    %cst_29 = arith.constant dense<0.000000e+00> : vector<4x64xf32>
    %81 = tpu.matmul %77, %0, %cst_29 {dimension_numbers = #tpu.dot_dimension_numbers<[1], [0], [0], [1], [0, 0, 1, 1], [], []>} : vector<4x64xf32>, vector<64x64xf32>, vector<4x64xf32> -> vector<4x64xf32>
    %82 = arith.addf %80, %81 : vector<4x64xf32>
    %83 = math.tanh %82 : vector<4x64xf32>
    %c6 = arith.constant 6 : index
    %c0_30 = arith.constant 0 : index
    %c0_31 = arith.constant 0 : index
    %84 = vector.load %arg1[%c6, %c0_30, %c0_31] : memref<8x4x64xf32, #tpu.memory_space<vmem>>, vector<1x4x64xf32>
    %85 = vector.shape_cast %84 : vector<1x4x64xf32> to vector<4x64xf32>
    %86 = arith.subf %83, %77 : vector<4x64xf32>
    %87 = arith.mulf %85, %86 : vector<4x64xf32>
    %88 = arith.addf %77, %87 : vector<4x64xf32>
    %89 = vector.extract_strided_slice %7 {offsets = [28, 0], sizes = [4, 64], strides = [1, 1]} : vector<32x64xf32> to vector<4x64xf32>
    %90 = vector.extract_strided_slice %7 {offsets = [0, 0], sizes = [4, 64], strides = [1, 1]} : vector<32x64xf32> to vector<4x64xf32>
    %91 = arith.select %10, %89, %90 : vector<4x64xi1>, vector<4x64xf32>
    %cst_32 = arith.constant dense<0.000000e+00> : vector<4x64xf32>
    %92 = tpu.matmul %88, %0, %cst_32 {dimension_numbers = #tpu.dot_dimension_numbers<[1], [0], [0], [1], [0, 0, 1, 1], [], []>} : vector<4x64xf32>, vector<64x64xf32>, vector<4x64xf32> -> vector<4x64xf32>
    %93 = arith.addf %91, %92 : vector<4x64xf32>
    %94 = math.tanh %93 : vector<4x64xf32>
    %c7 = arith.constant 7 : index
    %c0_33 = arith.constant 0 : index
    %c0_34 = arith.constant 0 : index
    %95 = vector.load %arg1[%c7, %c0_33, %c0_34] : memref<8x4x64xf32, #tpu.memory_space<vmem>>, vector<1x4x64xf32>
    %96 = vector.shape_cast %95 : vector<1x4x64xf32> to vector<4x64xf32>
    %97 = arith.subf %94, %88 : vector<4x64xf32>
    %98 = arith.mulf %96, %97 : vector<4x64xf32>
    %99 = arith.addf %88, %98 : vector<4x64xf32>
    %100 = vector.broadcast %1 : vector<1x64xf32> to vector<4x64xf32>
    %101 = arith.mulf %99, %100 : vector<4x64xf32>
    %cst_35 = arith.constant dense<0.000000e+00> : vector<4xf32>
    %102 = vector.multi_reduction <add>, %101, %cst_35 [1] : vector<4x64xf32> to vector<4xf32>
    %103 = vector.shape_cast %102 : vector<4xf32> to vector<4x1xf32>
    %c0_36 = arith.constant 0 : index
    %c0_37 = arith.constant 0 : index
    %104 = vector.load %arg6[%c0_36, %c0_37] : memref<1x1xf32, #tpu.memory_space<vmem>>, vector<1x1xf32>
    %105 = vector.broadcast %104 : vector<1x1xf32> to vector<4x1xf32>
    %106 = arith.addf %103, %105 : vector<4x1xf32>
    %107 = arith.negf %106 : vector<4x1xf32>
    %108 = math.exp %107 : vector<4x1xf32>
    %cst_38 = arith.constant 1.000000e+00 : f32
    %109 = vector.broadcast %cst_38 : f32 to vector<4x1xf32>
    %110 = arith.addf %109, %108 : vector<4x1xf32>
    %111 = arith.divf %109, %110 : vector<4x1xf32>
    %c0_39 = arith.constant 0 : index
    %c0_40 = arith.constant 0 : index
    %112 = vector.load %arg7[%c0_39, %c0_40] : memref<4x1xf32, #tpu.memory_space<vmem>>, vector<4x1xf32>
    tpu.vector_store %arg7[%c0_39, %c0_40], %111 {strides = array<i32>} : memref<4x1xf32, #tpu.memory_space<vmem>>, vector<4x1xf32>,
    return
  }
}

</mosaic_0001>

<bundles_post_ra>
// kernel: tpu_custom_call.1
= control target key start
LH: loop header
LB: loop body
LE: loop exit
PB: predicated region body
PF: predicated region fallthrough
CT: control target
= control target key end

     0   :  { %s1654_s0 = inlined_call_operand.hbm [shape: f32[32,32], index: 0, kind: input, shape index: {}]   ;;  %s1655_s1 = inlined_call_operand.hbm [shape: f32[8,4,64], index: 1, kind: input, shape index: {}]   ;;  %s1656_s2 = inlined_call_operand.hbm [shape: f32[32,64], index: 2, kind: input, shape index: {}]   ;;  %s1657_s3 = inlined_call_operand.hbm [shape: f32[64,64], index: 3, kind: input, shape index: {}]   ;;  %s1658_s4 = inlined_call_operand.vmem [shape: f32[1,64], index: 4, kind: input, shape index: {}]   ;;  %s1659_s5 = inlined_call_operand.vmem [shape: f32[1,64], index: 5, kind: input, shape index: {}]   ;;  %s1660_s6 = inlined_call_operand.<no memory space> [shape: f32[1,1], index: 6, kind: input, shape index: {}]   ;;  %s1661_s7 = inlined_call_operand.vmem [shape: f32[4,1], index: 7, kind: output, shape index: {}]  }
   0x1   :  { %v12_v0 = vstv %s1660_s6 }
   0x2   :  { %13 = vst [vmem:[#allocation2] sm:$0x1] %v12_v0 }
   0x3   :  { %14 = vsyncpa [#allocation4], 0 }
   0x4   :  { %15 = vsyncpa [#allocation6], 0 }
   0x5   :  { %16 = vsyncpa [#allocation9], 0  ;;  %s1419_s26 = smov [#allocation5]   ;;  %s1325_s30 = scalar_lea.hbm %s1655_s1, 512 }
   0x6   :  { %s34_s27 = sshll.u32 %s1419_s26, 4  ;;  %p1326_p0 = scmp.ne.s32.totalorder %s1655_s1, %s1325_s30  ;;  %s35_s27 = int_to_ptr.vmem [resolvable:$true] %s34_s27 }
   0x7   :  { %p1329_p1 = scmp.lt.u32.totalorder %s1325_s30, %s1655_s1 }
   0x9   :  { %p1331_p2 = pnand %p1329_p1, %p1326_p0 }
   0xb   :  { %1334 = shalt.err (!%p1331_p2)
}
   0xc   :  { %s1335_s6 = scalar_lea.vmem %s35_s27, 512  ;;  %p1340_p4 = scmp.lt.s32.totalorder %s35_s27, %s35_s27 }
   0xd   :  { %p1336_p3 = scmp.ne.s32.totalorder %s35_s27, %s1335_s6  ;;  %p1341_p5 = scmp.lt.s32.totalorder %s1335_s6, %s1335_s6 }
   0xf   :  { %p1342_p6 = por %p1341_p5, %p1340_p4 }
  0x11   :  { %p1343_p7 = pnand %p1342_p6, %p1336_p3 }
  0x13   :  { %1346 = shalt.err (!%p1343_p7)
}
  0x14   :  { %s1420_s12 = smov 64   ;;  %s1421_s13 = smov 4  }
  0x15   :  { %40 = dma.hbm_to_vmem [thread:$0]  %s1655_s1, 512, %s35_s27, [#allocation6], %s1420_s12, %s1420_s12, %s1421_s13  }
  0x16   :  { %s1422_s16 = smov [#allocation3]   ;;  %s1347_s20 = scalar_lea.hbm %s1654_s0, 512 }
  0x17   :  { %s22_s17 = sshll.u32 %s1422_s16, 4  ;;  %p1348_p8 = scmp.ne.s32.totalorder %s1654_s0, %s1347_s20  ;;  %s23_s17 = int_to_ptr.vmem [resolvable:$true] %s22_s17 }
  0x18   :  { %p1351_p9 = scmp.lt.u32.totalorder %s1347_s20, %s1654_s0 }
  0x1a   :  { %p1353_p10 = pnand %p1351_p9, %p1348_p8 }
  0x1c   :  { %1356 = shalt.err (!%p1353_p10)
}
  0x1d   :  { %s1357_s25 = scalar_lea.vmem %s23_s17, 512  ;;  %p1362_p12 = scmp.lt.s32.totalorder %s23_s17, %s23_s17 }
  0x1e   :  { %p1358_p11 = scmp.ne.s32.totalorder %s23_s17, %s1357_s25  ;;  %p1363_p13 = scmp.lt.s32.totalorder %s1357_s25, %s1357_s25 }
  0x20   :  { %p1364_p0 = por %p1363_p13, %p1362_p12 }
  0x22   :  { %p1365_p1 = pnand %p1364_p0, %p1358_p11 }
  0x24   :  { %1368 = shalt.err (!%p1365_p1)
}
  0x25   :  { %s1423_s1 = smov 128   ;;  %s1424_s26 = smov 8  }
  0x26   :  { %28 = dma.hbm_to_vmem [thread:$0]  %s1654_s0, 512, %s23_s17, [#allocation4], %s1423_s1, %s1423_s1, %s1424_s26  }
  0x27   :  { %s1425_s29 = smov [#allocation7]   ;;  %s1426_s8 = smov [#allocation8]  }
  0x28   :  { %s46_s30 = sshll.u32 %s1425_s29, 4  ;;  %s58_s9 = sshll.u32 %s1426_s8, 4  ;;  %s47_s30 = int_to_ptr.vmem [resolvable:$true] %s46_s30  ;;  %s1500_s9 = int_to_ptr.vmem [resolvable:$true] %s58_s9 }
  0x29   :  { %s1369_s6 = scalar_lea.hbm %s1656_s2, 512 }
  0x2a   :  { %p1370_p2 = scmp.ne.s32.totalorder %s1656_s2, %s1369_s6  ;;  %p1373_p3 = scmp.lt.u32.totalorder %s1369_s6, %s1656_s2 }
  0x2c   :  { %p1375_p4 = pnand %p1373_p3, %p1370_p2 }
  0x2e   :  { %1378 = shalt.err (!%p1375_p4)
}
  0x2f   :  { %s1379_s0 = scalar_lea.vmem %s47_s30, 512  ;;  %p1384_p6 = scmp.lt.s32.totalorder %s47_s30, %s47_s30 }
  0x30   :  { %p1380_p5 = scmp.ne.s32.totalorder %s47_s30, %s1379_s0  ;;  %p1385_p7 = scmp.lt.s32.totalorder %s1379_s0, %s1379_s0 }
  0x32   :  { %p1386_p8 = por %p1385_p7, %p1384_p6 }
  0x34   :  { %p1387_p9 = pnand %p1386_p8, %p1380_p5 }
  0x36   :  { %1390 = shalt.err (!%p1387_p9)
}
  0x37   :  { %52 = dma.hbm_to_vmem [thread:$0]  %s1656_s2, 512, %s47_s30, [#allocation6], %s1423_s1, %s1423_s1, %s1424_s26  }
  0x38   :  { %s1391_s20 = scalar_lea.hbm %s1657_s3, 1024 }
  0x39   :  { %p1392_p10 = scmp.ne.s32.totalorder %s1657_s3, %s1391_s20  ;;  %p1395_p11 = scmp.lt.u32.totalorder %s1391_s20, %s1657_s3 }
  0x3b   :  { %p1397_p12 = pnand %p1395_p11, %p1392_p10 }
  0x3d   :  { %1400 = shalt.err (!%p1397_p12)
}
  0x3e   :  { %s1401_s25 = scalar_lea.vmem %s1500_s9, 1024  ;;  %p1406_p0 = scmp.lt.s32.totalorder %s1500_s9, %s1500_s9 }
  0x3f   :  { %p1402_p13 = scmp.ne.s32.totalorder %s1500_s9, %s1401_s25  ;;  %p1407_p1 = scmp.lt.s32.totalorder %s1401_s25, %s1401_s25 }
  0x41   :  { %p1408_p2 = por %p1407_p1, %p1406_p0 }
  0x43   :  { %p1409_p3 = pnand %p1408_p2, %p1402_p13 }
  0x45   :  { %1412 = shalt.err (!%p1409_p3)
}
  0x46   :  { %64 = dma.hbm_to_vmem [thread:$0]  %s1657_s3, 1024, %s1500_s9, [#allocation9], %s1423_s1, %s1423_s1, %s1424_s26  }
  0x47   :  { %1413 = dma.done.wait [#allocation4], 512  }
  0x48   :  { %1414 = vsyncadd [#allocation4], 4294966784 }
  0x49   :  { %1415 = dma.done.wait [#allocation6], 1024  }
  0x4a   :  { %1416 = vsyncadd [#allocation6], 4294966272 }
  0x4b   :  { %1417 = dma.done.wait [#allocation9], 1024  }
  0x4c   :  { %1418 = vsyncadd [#allocation9], 4294966272  ;;  %v1427_v1 = vmov 0.0|0.0   ;;  %vm1428_vm0 = vmmov 0   ;;  %v1429_v2 = vmov 0.0   ;;  %v97_v3 = vld [vmem:[#allocation7] sm:$0xff]  ;;  %v205_v25 = vlaneseq }
  0x4d   :  { %1198 = vmatprep.subr.bf16.mxu1 %v1427_v1  ;;  %1054 = vmatprep.mubr.msk.f32.mxu1 %vm1428_vm0, %v1429_v2  ;;  %v98_v4 = vld [vmem:[#allocation7 + $0x8] sm:$0xff]  ;;  %v83_v5 = vld [vmem:[#allocation8] sm:$0xff]  ;;  %vm107_vm1 = vcmask 261120   ;;  %v99_v8 = vld [vmem:[#allocation7 + $0x10] sm:$0xff]  ;;  %vm212_vm3 = vcmask 523264   ;;  %vm902_vm4 = vcmask 519168  }
  0x4e   :  { %v1190_v6 = vpack.c.bf16 %v98_v4, %v97_v3  ;;  %v84_v7 = vld [vmem:[#allocation8 + $0x8] sm:$0xff]  ;;  %v100_v9 = vld [vmem:[#allocation7 + $0x18] sm:$0xff]  ;;  %v85_v12 = vld [vmem:[#allocation8 + $0x10] sm:$0xff]  ;;  %v206_v28 = vand.u32 127, %v205_v25  ;;  %vm920_vm5 = vcmask 3072  }
  0x4f   :  { %v1540_v10 = vpack.c.bf16 %v84_v7, %v83_v5  ;;  %v1194_v11 = vpack.c.bf16 %v100_v9, %v99_v8  ;;  %v86_v13 = vld [vmem:[#allocation8 + $0x18] sm:$0xff]  ;;  %v93_v14 = vld [vmem:[#allocation3] sm:$0xff]  ;;  %v88_v17 = vld [vmem:[#allocation8 + $0x28] sm:$0xff] }
  0x50   :  { %1191 = vmatprep.subr.bf16.mxu0 %v1190_v6  ;;  %1032 = vmatprep.mubr.msk.f32.mxu0 %vm107_vm1, %v93_v14  ;;  %v1544_v15 = vpack.c.bf16 %v86_v13, %v85_v12  ;;  %v87_v16 = vld [vmem:[#allocation8 + $0x20] sm:$0xff]  ;;  %v94_v18 = vld [vmem:[#allocation3 + $0x8] sm:$0xff]  ;;  %v95_v20 = vld [vmem:[#allocation3 + $0x10] sm:$0xff]  ;;  %vm207_vm2 = vcmp.lt.s32.totalorder %v206_v28, 32 }
  0x51   :  { %1193 = vmatpush3.bf16.msra.mxu0 %v1190_v6  ;;  %1200 = vmatpush3.bf16.msra.mxu1 %v1540_v10  ;;  %v1548_v19 = vpack.c.bf16 %v88_v17, %v87_v16  ;;  %v89_v21 = vld [vmem:[#allocation8 + $0x30] sm:$0xff]  ;;  %v90_v22 = vld [vmem:[#allocation8 + $0x38] sm:$0xff]  ;;  %v288_v47 = vld [vmem:[#allocation5] sm:$0xf] }
  0x52   :  { %1195 = vmatprep.subr.bf16.mxu0 %v1194_v11  ;;  %1201 = vmatprep.subr.bf16.mxu1 %v1427_v1  ;;  %v96_v23 = vld [vmem:[#allocation3 + $0x18] sm:$0xff]  ;;  %v1555_v24 = vpack.c.bf16 %v90_v22, %v89_v21  ;;  %v370_v57 = vld [vmem:[#allocation5 + $0x4] sm:$0xf]  ;;  %v459_v3 = vld [vmem:[#allocation5 + $0x8] sm:$0xf] }
  0x53   :  { %v929_v26 = vld [vmem:[%s1658_s4] ss:$0 sm:$0xff]  ;;  %v542_v16 = vld [vmem:[#allocation5 + $0xc] sm:$0xf] }
  0x55   :  { %1197 = vmatpush3.bf16.msra.mxu0 %v1194_v11  ;;  %1203 = vmatpush3.bf16.msra.mxu1 %v1544_v15 }
  0x56   :  { %1204 = vmatprep.subr.bf16.mxu1 %v1427_v1  ;;  %1210 = vmatprep.subr.bf16.mxu0 %v1427_v1 }
  0x58   :  { %1033 = vmatmul.mubr.msk.f32.vlgmr.msra.gmra.mrb[0].mxu0 %vm107_vm1, %v94_v18 }
  0x59   :  { %1206 = vmatpush3.bf16.msra.mxu1 %v1548_v19  ;;  %1035 = vmatprep.mubr.msk.f32.mxu0 %vm107_vm1, %v95_v20 }
  0x5a   :  { %1207 = vmatprep.subr.bf16.mxu1 %v1427_v1  ;;  %1212 = vmatpush3.bf16.msra.mxu0 %v1540_v10 }
  0x5b   :  { %1213 = vmatprep.subr.bf16.mxu0 %v1427_v1 }
  0x5c   :  { %1036 = vmatmul.mubr.msk.f32.gmra.mrb[2].mxu0 %vm107_vm1, %v96_v23 }
  0x5d   :  { %1209 = vmatpush3.bf16.msra.mxu1 %v1555_v24  ;;  %1073 = vmatprep.mubr.msk.f32.mxu0 %vm1428_vm0, %v1429_v2 }
  0x5e   :  { %1215 = vmatpush3.bf16.msra.mxu0 %v1544_v15  ;;  %1222 = vmatprep.subr.bf16.mxu1 %v1427_v1 }
  0x5f   :  { %1216 = vmatprep.subr.bf16.mxu0 %v1427_v1 }
  0x60   :  { %1055 = vmatmul.mubr.f32.vlgmr.msra.gmra.mrb[0].mxu1 %v1429_v2 }
  0x61   :  { %1224 = vmatpush3.bf16.msra.mxu1 %v1540_v10  ;;  %1092 = vmatprep.mubr.msk.f32.mxu1 %vm1428_vm0, %v1429_v2 }
  0x62   :  { %1218 = vmatpush3.bf16.msra.mxu0 %v1548_v19  ;;  %1225 = vmatprep.subr.bf16.mxu1 %v1427_v1 }
  0x63   :  { %1219 = vmatprep.subr.bf16.mxu0 %v1427_v1 }
  0x65   :  { %1227 = vmatpush3.bf16.msra.mxu1 %v1544_v15 }
  0x66   :  { %1221 = vmatpush3.bf16.msra.mxu0 %v1555_v24  ;;  %1228 = vmatprep.subr.bf16.mxu1 %v1427_v1 }
  0x67   :  { %1234 = vmatprep.subr.bf16.mxu0 %v1427_v1 }
  0x69   :  { %1230 = vmatpush3.bf16.msra.mxu1 %v1548_v19 }
  0x6a   :  { %1231 = vmatprep.subr.bf16.mxu1 %v1427_v1 }
  0x6d   :  { %1233 = vmatpush3.bf16.msra.mxu1 %v1555_v24 }
  0x6e   :  { %1246 = vmatprep.subr.bf16.mxu1 %v1427_v1 }
 0x12b   :  { %v1034_v27 = vpop.f32.mrb[0].mxu0 }
 0x12c   :  { %v192_v29 = vadd.f32 %v1034_v27, %v929_v26  ;;  %v186_v30 = vpop.f32.mrb[1].mxu0 }
 0x12d   :  { %v187_v31 = vadd.f32 %v929_v26, %v186_v30 }
 0x12e   :  { %v552_v36 = vrot.slane %v192_v29, 4 }
 0x12f   :  { %v724_v32 = vrot.slane %v187_v31, 4  ;;  %v1037_v33 = vpop.f32.mrb[2].mxu0 }
 0x130   :  { %v202_v34 = vadd.f32 %v1037_v33, %v929_v26  ;;  %v196_v35 = vpop.f32.mrb[3].mxu0 }
 0x131   :  { %v197_v37 = vadd.f32 %v929_v26, %v196_v35  ;;  %v631_v26 = vld [vmem:[#allocation5 + $0x10] sm:$0xf]  ;;  %v714_v35 = vld [vmem:[#allocation5 + $0x14] sm:$0xf] }
 0x132   :  { %v209_v38 = vrot.slane %v202_v34, 4  ;;  %v1585_v39 = vsel %vm207_vm2, %v202_v34, %v724_v32 }
 0x133   :  { %v380_v40 = vrot.slane %v197_v37, 4  ;;  %v282_v41 = vpop.f32.mrb[0].mxu1  ;;  %v1587_v42 = vsel %vm207_vm2, %v197_v37, %v552_v36 }
 0x134   :  { %v211_v43 = vsel %vm207_vm2, %v187_v31, %v209_v38  ;;  %v1056_v44 = vpop.f32.mrb[1].mxu1 }
 0x135   :  { %v286_v45 = vadd.f32 %v282_v41, %v211_v43  ;;  %v382_v46 = vsel %vm207_vm2, %v192_v29, %v380_v40  ;;  %v803_v40 = vld [vmem:[#allocation5 + $0x18] sm:$0xf] }
 0x137   :  { %1305 = vtanh.f32 %v286_v45 }
 0x141   :  { %v1306_v48 = vpop.eup %1305 }
 0x142   :  { %v289_v49 = vmul.f32 %v1306_v48, %v288_v47 }
 0x144   :  { %1074 = vmatmul.mubr.msk.f32.vlgmr.msra.gmra.mrb[4].mxu0 %vm212_vm3, %v289_v49  ;;  %v371_v54 = vrot.slane %v289_v49, 4 }
 0x145   :  { %1236 = vmatpush3.bf16.msra.mxu0 %v1540_v10  ;;  %1111 = vmatprep.mubr.msk.f32.mxu0 %vm1428_vm0, %v1429_v2 }
 0x146   :  { %1237 = vmatprep.subr.bf16.mxu0 %v1427_v1 }
 0x149   :  { %1239 = vmatpush3.bf16.msra.mxu0 %v1544_v15 }
 0x14a   :  { %1240 = vmatprep.subr.bf16.mxu0 %v1427_v1 }
 0x14d   :  { %1242 = vmatpush3.bf16.msra.mxu0 %v1548_v19 }
 0x14e   :  { %1243 = vmatprep.subr.bf16.mxu0 %v1427_v1 }
 0x151   :  { %1245 = vmatpush3.bf16.msra.mxu0 %v1555_v24 }
 0x152   :  { %1258 = vmatprep.subr.bf16.mxu0 %v1427_v1 }
 0x217   :  { %v360_v50 = vpop.f32.mrb[4].mxu0 }
 0x218   :  { %v365_v51 = vrot.slane %v360_v50, 4  ;;  %v1075_v52 = vpop.f32.mrb[5].mxu0 }
 0x21a   :  { %v367_v53 = vadd.f32 %v365_v51, %v211_v43  ;;  %v886_v51 = vld [vmem:[#allocation5 + $0x1c] sm:$0xf] }
 0x21c   :  { %1307 = vtanh.f32 %v367_v53 }
 0x226   :  { %v1308_v55 = vpop.eup %1307 }
 0x227   :  { %v373_v56 = vsub.f32 %v1308_v55, %v371_v54  ;;  %v941_v54 = vld [vmem:[%s1659_s5] ss:$0 sm:$0xff] }
 0x229   :  { %v375_v58 = vrot.slane %v373_v56, 4 }
 0x22b   :  { %v377_v59 = vmul.f32 %v375_v58, %v370_v57  ;;  %v942_v58 = vld [vmem:[#allocation2] ss:$0 sm:$0xff] }
 0x22d   :  { %v378_v60 = vadd.f32 %v377_v59, %v289_v49 }
 0x22f   :  { %1093 = vmatmul.mubr.msk.f32.vlgmr.msra.gmra.mrb[2].mxu1 %vm212_vm3, %v378_v60 }
 0x230   :  { %1248 = vmatpush3.bf16.msra.mxu1 %v1540_v10  ;;  %1130 = vmatprep.mubr.msk.f32.mxu1 %vm1428_vm0, %v1429_v2 }
 0x231   :  { %1249 = vmatprep.subr.bf16.mxu1 %v1427_v1 }
 0x234   :  { %1251 = vmatpush3.bf16.msra.mxu1 %v1544_v15 }
 0x235   :  { %1252 = vmatprep.subr.bf16.mxu1 %v1427_v1 }
 0x238   :  { %1254 = vmatpush3.bf16.msra.mxu1 %v1548_v19 }
 0x239   :  { %1255 = vmatprep.subr.bf16.mxu1 %v1427_v1 }
 0x23c   :  { %1257 = vmatpush3.bf16.msra.mxu1 %v1555_v24 }
 0x23d   :  { %1270 = vmatprep.subr.bf16.mxu1 %v1427_v1 }
 0x302   :  { %v452_v61 = vpop.f32.mrb[2].mxu1 }
 0x303   :  { %v456_v62 = vadd.f32 %v452_v61, %v382_v46  ;;  %v1094_v63 = vpop.f32.mrb[3].mxu1 }
 0x305   :  { %1309 = vtanh.f32 %v456_v62 }
 0x30f   :  { %v1310_v0 = vpop.eup %1309 }
 0x310   :  { %v460_v4 = vsub.f32 %v1310_v0, %v378_v60 }
 0x312   :  { %v461_v5 = vmul.f32 %v460_v4, %v459_v3 }
 0x314   :  { %v462_v6 = vadd.f32 %v461_v5, %v378_v60 }
 0x316   :  { %1112 = vmatmul.mubr.msk.f32.vlgmr.msra.gmra.mrb[6].mxu0 %vm212_vm3, %v462_v6  ;;  %v543_v12 = vrot.slane %v462_v6, 4 }
 0x317   :  { %1260 = vmatpush3.bf16.msra.mxu0 %v1540_v10  ;;  %1149 = vmatprep.mubr.msk.f32.mxu0 %vm1428_vm0, %v1429_v2 }
 0x318   :  { %1261 = vmatprep.subr.bf16.mxu0 %v1427_v1 }
 0x31b   :  { %1263 = vmatpush3.bf16.msra.mxu0 %v1544_v15 }
 0x31c   :  { %1264 = vmatprep.subr.bf16.mxu0 %v1427_v1 }
 0x31f   :  { %1266 = vmatpush3.bf16.msra.mxu0 %v1548_v19 }
 0x320   :  { %1267 = vmatprep.subr.bf16.mxu0 %v1427_v1 }
 0x323   :  { %1269 = vmatpush3.bf16.msra.mxu0 %v1555_v24 }
 0x324   :  { %1282 = vmatprep.subr.bf16.mxu0 %v1427_v1 }
 0x3e9   :  { %v532_v7 = vpop.f32.mrb[6].mxu0 }
 0x3ea   :  { %v537_v8 = vrot.slane %v532_v7, 4  ;;  %v1113_v9 = vpop.f32.mrb[7].mxu0 }
 0x3ec   :  { %v539_v11 = vadd.f32 %v537_v8, %v382_v46 }
 0x3ee   :  { %1311 = vtanh.f32 %v539_v11 }
 0x3f8   :  { %v1312_v13 = vpop.eup %1311 }
 0x3f9   :  { %v545_v14 = vsub.f32 %v1312_v13, %v543_v12 }
 0x3fb   :  { %v547_v17 = vrot.slane %v545_v14, 4 }
 0x3fd   :  { %v549_v18 = vmul.f32 %v547_v17, %v542_v16 }
 0x3ff   :  { %v550_v20 = vadd.f32 %v549_v18, %v462_v6 }
 0x401   :  { %1131 = vmatmul.mubr.msk.f32.vlgmr.msra.gmra.mrb[4].mxu1 %vm212_vm3, %v550_v20 }
 0x402   :  { %1272 = vmatpush3.bf16.msra.mxu1 %v1540_v10  ;;  %1168 = vmatprep.mubr.msk.f32.mxu1 %vm1428_vm0, %v1429_v2 }
 0x403   :  { %1273 = vmatprep.subr.bf16.mxu1 %v1427_v1 }
 0x406   :  { %1275 = vmatpush3.bf16.msra.mxu1 %v1544_v15 }
 0x407   :  { %1276 = vmatprep.subr.bf16.mxu1 %v1427_v1 }
 0x40a   :  { %1278 = vmatpush3.bf16.msra.mxu1 %v1548_v19 }
 0x40b   :  { %1279 = vmatprep.subr.bf16.mxu1 %v1427_v1 }
 0x40e   :  { %1281 = vmatpush3.bf16.msra.mxu1 %v1555_v24 }
 0x4d4   :  { %v624_v21 = vpop.f32.mrb[4].mxu1 }
 0x4d5   :  { %v628_v22 = vadd.f32 %v624_v21, %v1587_v42  ;;  %v1132_v23 = vpop.f32.mrb[5].mxu1 }
 0x4d7   :  { %1313 = vtanh.f32 %v628_v22 }
 0x4e1   :  { %v1314_v25 = vpop.eup %1313 }
 0x4e2   :  { %v632_v27 = vsub.f32 %v1314_v25, %v550_v20 }
 0x4e4   :  { %v633_v28 = vmul.f32 %v632_v27, %v631_v26 }
 0x4e6   :  { %v634_v29 = vadd.f32 %v633_v28, %v550_v20 }
 0x4e8   :  { %1150 = vmatmul.mubr.msk.f32.vlgmr.msra.gmra.mrb[8].mxu0 %vm212_vm3, %v634_v29  ;;  %v715_v33 = vrot.slane %v634_v29, 4 }
 0x4e9   :  { %1284 = vmatpush3.bf16.msra.mxu0 %v1540_v10  ;;  %1187 = vmatprep.mubr.msk.f32.mxu0 %vm1428_vm0, %v1429_v2 }
 0x4ea   :  { %1285 = vmatprep.subr.bf16.mxu0 %v1427_v1 }
 0x4ed   :  { %1287 = vmatpush3.bf16.msra.mxu0 %v1544_v15 }
 0x4ee   :  { %1288 = vmatprep.subr.bf16.mxu0 %v1427_v1 }
 0x4f1   :  { %1290 = vmatpush3.bf16.msra.mxu0 %v1548_v19 }
 0x4f2   :  { %1291 = vmatprep.subr.bf16.mxu0 %v1427_v1 }
 0x4f5   :  { %1293 = vmatpush3.bf16.msra.mxu0 %v1555_v24 }
 0x5bb   :  { %v704_v30 = vpop.f32.mrb[8].mxu0 }
 0x5bc   :  { %v709_v31 = vrot.slane %v704_v30, 4  ;;  %v1151_v32 = vpop.f32.mrb[9].mxu0 }
 0x5be   :  { %v711_v10 = vadd.f32 %v709_v31, %v1587_v42 }
 0x5c0   :  { %1315 = vtanh.f32 %v711_v10 }
 0x5ca   :  { %v1316_v2 = vpop.eup %1315 }
 0x5cb   :  { %v717_v34 = vsub.f32 %v1316_v2, %v715_v33 }
 0x5cd   :  { %v719_v36 = vrot.slane %v717_v34, 4 }
 0x5cf   :  { %v721_v15 = vmul.f32 %v719_v36, %v714_v35 }
 0x5d1   :  { %v722_v37 = vadd.f32 %v721_v15, %v634_v29 }
 0x5d3   :  { %1169 = vmatmul.mubr.msk.f32.vlgmr.msra.gmra.mrb[6].mxu1 %vm212_vm3, %v722_v37 }
 0x6a6   :  { %v796_v19 = vpop.f32.mrb[6].mxu1 }
 0x6a7   :  { %v800_v1 = vadd.f32 %v796_v19, %v1585_v39  ;;  %v1170_v38 = vpop.f32.mrb[7].mxu1 }
 0x6a9   :  { %1317 = vtanh.f32 %v800_v1 }
 0x6b3   :  { %v1318_v24 = vpop.eup %1317 }
 0x6b4   :  { %v804_v41 = vsub.f32 %v1318_v24, %v722_v37 }
 0x6b6   :  { %v805_v43 = vmul.f32 %v804_v41, %v803_v40 }
 0x6b8   :  { %v806_v42 = vadd.f32 %v805_v43, %v722_v37 }
 0x6ba   :  { %1188 = vmatmul.mubr.msk.f32.vlgmr.msra.gmra.mrb[10].mxu0 %vm212_vm3, %v806_v42  ;;  %v887_v48 = vrot.slane %v806_v42, 4 }
 0x78d   :  { %v876_v44 = vpop.f32.mrb[10].mxu0 }
 0x78e   :  { %v881_v45 = vrot.slane %v876_v44, 4  ;;  %v1189_v46 = vpop.f32.mrb[11].mxu0 }
 0x790   :  { %v883_v47 = vadd.f32 %v881_v45, %v1585_v39 }
 0x792   :  { %1319 = vtanh.f32 %v883_v47 }
 0x79c   :  { %v1320_v49 = vpop.eup %1319 }
 0x79d   :  { %v889_v50 = vsub.f32 %v1320_v49, %v887_v48 }
 0x79f   :  { %v891_v52 = vrot.slane %v889_v50, 4 }
 0x7a1   :  { %v893_v53 = vmul.f32 %v891_v52, %v886_v51 }
 0x7a3   :  { %v894_v55 = vadd.f32 %v893_v53, %v806_v42 }
 0x7a5   :  { %v901_v56 = vmul.f32 %v941_v54, %v894_v55 }
 0x7a7   :  { %v903_v57 = vsel %vm902_vm4, %v901_v56, 0.0 }
 0x7a8   :  { %904 = vadd.xlane.f32.xlu0 %v903_v57 }
 0x835   :  { %v905_v59 = vpop.xlane.xlu0 %904 }
 0x836   :  { %v913_v60 = vadd.f32 %v942_v58, %v905_v59 }
 0x838   :  { %v943_v39 = vmul.f32 -1.442695, %v913_v60 }
 0x83a   :  { %1321 = vpow2.f32 %v943_v39 }
 0x844   :  { %v1322_v61 = vpop.eup %1321 }
 0x845   :  { %v917_v62 = vadd.f32 1.0, %v1322_v61 }
 0x847   :  { %1323 = vrcp.f32 %v917_v62 }
 0x851   :  { %v1324_v63 = vpop.eup %1323 }
 0x852   :  { %921 = vst.msk [vmem:[%s1661_s7] sm:$0xf] %vm920_vm5, %v1324_v63 }
 0x853   :  { %926 = vsyncpa [#allocation4], 1 }
 0x854   :  { %927 = vsyncpa [#allocation6], 1 }
 0x855   :  { %928 = vsyncpa [#allocation9], 1 }

</bundles_post_ra>
